<compile_context>
chip_gen: v7x
topology: tpu7x:2x2x1
jax: 0.10.0
libtpu: 0.0.40
codegen_flags: <defaults>
</compile_context>

<pallas_src>
import jax
import jax.numpy as jnp
from jax.experimental import pallas as pl
from jax.experimental.pallas import tpu as pltpu


# ---------------------------------------------------------------------------
# Kernels
# ---------------------------------------------------------------------------
def _max_pool_kernel(rgb_ref, dep_ref, mxr_ref, mxd_ref):
    """Tiled global max pool.

    rgb_ref, dep_ref : (C, T)  -- spatial tile, channels on sublanes, HW on lanes
    mxr_ref, mxd_ref : (C, 1)  -- per-channel running max (resident across tiles)
    """
    t = pl.program_id(1)
    mr = jnp.max(rgb_ref[...], axis=-1, keepdims=True)   # (C, 1) lane reduce (XLU)
    md = jnp.max(dep_ref[...], axis=-1, keepdims=True)   # (C, 1)

    @pl.when(t == 0)
    def _():
        mxr_ref[...] = mr
        mxd_ref[...] = md

    @pl.when(t > 0)
    def _():
        mxr_ref[...] = jnp.maximum(mxr_ref[...], mr)
        mxd_ref[...] = jnp.maximum(mxd_ref[...], md)


def _gate_kernel(dep_ref, scale_ref, out_ref):
    """Per-channel gating: depth (C, T) * scale (C, 1), pure streaming."""
    out_ref[...] = dep_ref[...] * scale_ref[...]


# ---------------------------------------------------------------------------
# Wrapper
# ---------------------------------------------------------------------------
def _pick_spatial_tile(hw, c, dtype_bytes, block_budget_bytes=2 << 20):
    """Largest spatial tile T with: T divides hw, T % 128 == 0 (or T == hw),
    and a (c, T) block stays under a per-buffer VMEM budget."""
    max_t = block_budget_bytes // max(1, c * dtype_bytes)
    if hw <= max_t:
        return hw
    if hw % 128 != 0:
        return hw  # cannot tile legally along lanes; use full-extent block
    t = (min(max_t, hw) // 128) * 128
    while t >= 128:
        if hw % t == 0:
            return t
        t -= 128
    return hw


def ca_enhance(rgb, depth, w1, w2):
    """rgb, depth: (N, C, H, W) NCHW.  w1: (2C, 2C), w2: (C, 2C).  Returns (N, C, H, W)."""
    N, C, H, W = rgb.shape
    HW = H * W
    dtype_bytes = jnp.dtype(depth.dtype).itemsize
    T = _pick_spatial_tile(HW, C, dtype_bytes)
    n_tiles = HW // T

    # NCHW -> (N, C, HW): pure reshape (no data movement); HW lands on TPU lanes.
    rgb_l = rgb.reshape(N, C, HW)
    dep_l = depth.reshape(N, C, HW)

    # ---- pass 1: global max pool over the spatial axis (tiled reduction) ----
    mx_rgb, mx_dep = pl.pallas_call(
        _max_pool_kernel,
        out_shape=(jax.ShapeDtypeStruct((N, C, 1), rgb.dtype),
                   jax.ShapeDtypeStruct((N, C, 1), depth.dtype)),
        grid_spec=pltpu.PrefetchScalarGridSpec(
            num_scalar_prefetch=0,
            grid=(N, n_tiles),
            in_specs=[
                pl.BlockSpec((None, C, T), lambda b, t: (b, 0, t)),
                pl.BlockSpec((None, C, T), lambda b, t: (b, 0, t)),
            ],
            out_specs=[
                pl.BlockSpec((None, C, 1), lambda b, t: (b, 0, 0)),
                pl.BlockSpec((None, C, 1), lambda b, t: (b, 0, 0)),
            ],
        ),
        compiler_params=pltpu.CompilerParams(
            dimension_semantics=("parallel", "arbitrary")),
    )(rgb_l, dep_l)

    # ---- tiny fc1 -> relu -> fc2 -> sigmoid on (N, 2C) floats: plain JAX ----
    # (concat order matches torch.cat((rgb, depth), dim=1))
    mx = jnp.concatenate([mx_rgb.reshape(N, C), mx_dep.reshape(N, C)], axis=-1)
    mx = mx.astype(jnp.float32)
    y = jnp.maximum(mx @ w1.astype(jnp.float32).T, 0.0)          # fc1 + ReLU
    z = y @ w2.astype(jnp.float32).T                             # fc2 -> (N, C)
    scale = jax.nn.sigmoid(z).astype(depth.dtype).reshape(N, C, 1)

    # ---- pass 2: per-channel gating of depth (pure streaming, lane-dense) ----
    out = pl.pallas_call(
        _gate_kernel,
        out_shape=jax.ShapeDtypeStruct((N, C, HW), depth.dtype),
        grid_spec=pltpu.PrefetchScalarGridSpec(
            num_scalar_prefetch=0,
            grid=(N, n_tiles),
            in_specs=[
                pl.BlockSpec((None, C, T), lambda b, t: (b, 0, t)),
                pl.BlockSpec((None, C, 1), lambda b, t: (b, 0, 0)),
            ],
            out_specs=pl.BlockSpec((None, C, T), lambda b, t: (b, 0, t)),
        ),
        compiler_params=pltpu.CompilerParams(
            dimension_semantics=("parallel", "parallel")),
    )(dep_l, scale)

    # (N, C, HW) -> NCHW: pure reshape, free.
    return out.reshape(N, C, H, W)


# ---------------------------------------------------------------------------
# Pure-JAX reference (matches the PyTorch forward)
# ---------------------------------------------------------------------------
def ca_enhance_ref(rgb, depth, w1, w2):
    x = jnp.concatenate([rgb, depth], axis=1)          # (N, 2C, H, W)
    mx = jnp.max(x, axis=(2, 3))                       # (N, 2C)  adaptive max pool
    y = jnp.maximum(mx @ w1.T, 0.0)                    # fc1 + relu
    z = y @ w2.T                                       # fc2
    s = jax.nn.sigmoid(z)[:, :, None, None]            # (N, C, 1, 1)
    return depth * s


if __name__ == "__main__":
    # Small shapes: batch=2, per-branch channels=4 (in_planes=8), spatial=16x16.
    N, C, H, W = 2, 4, 16, 16
    in_planes = 2 * C

    key = jax.random.PRNGKey(0)
    k_rgb, k_dep, k_w1, k_w2 = jax.random.split(key, 4)

    rgb = jax.random.normal(k_rgb, (N, C, H, W), dtype=jnp.float32)
    depth = jax.random.normal(k_dep, (N, C, H, W), dtype=jnp.float32)

    # PyTorch weight shapes: fc1 (2C, 2C, 1, 1), fc2 (C, 2C, 1, 1); bias=False.
    w1 = 0.1 * jax.random.normal(k_w1, (in_planes, in_planes), dtype=jnp.float32)
    w2 = 0.1 * jax.random.normal(k_w2, (in_planes // 2, in_planes), dtype=jnp.float32)

    out = ca_enhance(rgb, depth, w1, w2)
    out = jax.block_until_ready(out)

    ref = ca_enhance_ref(rgb, depth, w1, w2)
    assert out.shape == (N, C, H, W)
    assert jnp.allclose(out, ref, atol=1e-5, rtol=1e-5), "mismatch vs reference"

    print("KERNEL_OK")
</pallas_src>

<mosaic_0001>
module attributes {stable_mosaic.version = 11 : i64} {
  func.func @_max_pool_kernel(%arg0: i32, %arg1: i32, %arg2: memref<1x4x256xf32, #tpu.memory_space<vmem>>, %arg3: memref<1x4x256xf32, #tpu.memory_space<vmem>>, %arg4: memref<1x4x1xf32, #tpu.memory_space<vmem>>, %arg5: memref<1x4x1xf32, #tpu.memory_space<vmem>>) attributes {dimension_semantics = [#tpu.dimension_semantics<parallel>, #tpu.dimension_semantics<arbitrary>], iteration_bounds = array<i64: 2, 1>, scalar_prefetch = 0 : i64, scratch_operands = 0 : i64, tpu.core_type = #tpu.core_type<tc>, window_params = [{transform_indices = @transform_0, window_bounds = array<i64: 1, 4, 256>}, {transform_indices = @transform_1, window_bounds = array<i64: 1, 4, 256>}, {transform_indices = @transform_2, window_bounds = array<i64: 1, 4, 1>}, {transform_indices = @transform_3, window_bounds = array<i64: 1, 4, 1>}]} {
    %c0 = arith.constant 0 : index
    %c0_0 = arith.constant 0 : index
    %c0_1 = arith.constant 0 : index
    %0 = vector.load %arg2[%c0, %c0_0, %c0_1] : memref<1x4x256xf32, #tpu.memory_space<vmem>>, vector<1x4x256xf32>
    %1 = vector.shape_cast %0 : vector<1x4x256xf32> to vector<4x256xf32>
    %cst = arith.constant dense<0xFF800000> : vector<4xf32>
    %2 = vector.multi_reduction <maximumf>, %1, %cst [1] : vector<4x256xf32> to vector<4xf32>
    %3 = vector.shape_cast %2 : vector<4xf32> to vector<4x1xf32>
    %c0_2 = arith.constant 0 : index
    %c0_3 = arith.constant 0 : index
    %c0_4 = arith.constant 0 : index
    %4 = vector.load %arg3[%c0_2, %c0_3, %c0_4] : memref<1x4x256xf32, #tpu.memory_space<vmem>>, vector<1x4x256xf32>
    %5 = vector.shape_cast %4 : vector<1x4x256xf32> to vector<4x256xf32>
    %cst_5 = arith.constant dense<0xFF800000> : vector<4xf32>
    %6 = vector.multi_reduction <maximumf>, %5, %cst_5 [1] : vector<4x256xf32> to vector<4xf32>
    %7 = vector.shape_cast %6 : vector<4xf32> to vector<4x1xf32>
    %c0_i32 = arith.constant 0 : i32
    %8 = arith.cmpi eq, %arg1, %c0_i32 : i32
    %9 = arith.extui %8 : i1 to i32
    %c0_i32_6 = arith.constant 0 : i32
    %10 = arith.cmpi ne, %9, %c0_i32_6 : i32
    scf.if %10 {
      %c0_9 = arith.constant 0 : index
      %c0_10 = arith.constant 0 : index
      %c0_11 = arith.constant 0 : index
      %14 = vector.load %arg4[%c0_9, %c0_10, %c0_11] : memref<1x4x1xf32, #tpu.memory_space<vmem>>, vector<1x4x1xf32>
      %15 = vector.shape_cast %14 : vector<1x4x1xf32> to vector<4x1xf32>
      %16 = vector.shape_cast %3 : vector<4x1xf32> to vector<1x4x1xf32>
      tpu.vector_store %arg4[%c0_9, %c0_10, %c0_11], %16 {strides = array<i32>} : memref<1x4x1xf32, #tpu.memory_space<vmem>>, vector<1x4x1xf32>,
      %c0_12 = arith.constant 0 : index
      %c0_13 = arith.constant 0 : index
      %c0_14 = arith.constant 0 : index
      %17 = vector.load %arg5[%c0_12, %c0_13, %c0_14] : memref<1x4x1xf32, #tpu.memory_space<vmem>>, vector<1x4x1xf32>
      %18 = vector.shape_cast %17 : vector<1x4x1xf32> to vector<4x1xf32>
      %19 = vector.shape_cast %7 : vector<4x1xf32> to vector<1x4x1xf32>
      tpu.vector_store %arg5[%c0_12, %c0_13, %c0_14], %19 {strides = array<i32>} : memref<1x4x1xf32, #tpu.memory_space<vmem>>, vector<1x4x1xf32>,
    } else {
    }
    %c0_i32_7 = arith.constant 0 : i32
    %11 = arith.cmpi sgt, %arg1, %c0_i32_7 : i32
    %12 = arith.extui %11 : i1 to i32
    %c0_i32_8 = arith.constant 0 : i32
    %13 = arith.cmpi ne, %12, %c0_i32_8 : i32
    scf.if %13 {
      %c0_9 = arith.constant 0 : index
      %c0_10 = arith.constant 0 : index
      %c0_11 = arith.constant 0 : index
      %14 = vector.load %arg4[%c0_9, %c0_10, %c0_11] : memref<1x4x1xf32, #tpu.memory_space<vmem>>, vector<1x4x1xf32>
      %15 = vector.shape_cast %14 : vector<1x4x1xf32> to vector<4x1xf32>
      %16 = arith.maximumf %15, %3 : vector<4x1xf32>
      %c0_12 = arith.constant 0 : index
      %c0_13 = arith.constant 0 : index
      %c0_14 = arith.constant 0 : index
      %17 = vector.load %arg4[%c0_12, %c0_13, %c0_14] : memref<1x4x1xf32, #tpu.memory_space<vmem>>, vector<1x4x1xf32>
      %18 = vector.shape_cast %17 : vector<1x4x1xf32> to vector<4x1xf32>
      %19 = vector.shape_cast %16 : vector<4x1xf32> to vector<1x4x1xf32>
      tpu.vector_store %arg4[%c0_12, %c0_13, %c0_14], %19 {strides = array<i32>} : memref<1x4x1xf32, #tpu.memory_space<vmem>>, vector<1x4x1xf32>,
      %c0_15 = arith.constant 0 : index
      %c0_16 = arith.constant 0 : index
      %c0_17 = arith.constant 0 : index
      %20 = vector.load %arg5[%c0_15, %c0_16, %c0_17] : memref<1x4x1xf32, #tpu.memory_space<vmem>>, vector<1x4x1xf32>
      %21 = vector.shape_cast %20 : vector<1x4x1xf32> to vector<4x1xf32>
      %22 = arith.maximumf %21, %7 : vector<4x1xf32>
      %c0_18 = arith.constant 0 : index
      %c0_19 = arith.constant 0 : index
      %c0_20 = arith.constant 0 : index
      %23 = vector.load %arg5[%c0_18, %c0_19, %c0_20] : memref<1x4x1xf32, #tpu.memory_space<vmem>>, vector<1x4x1xf32>
      %24 = vector.shape_cast %23 : vector<1x4x1xf32> to vector<4x1xf32>
      %25 = vector.shape_cast %22 : vector<4x1xf32> to vector<1x4x1xf32>
      tpu.vector_store %arg5[%c0_18, %c0_19, %c0_20], %25 {strides = array<i32>} : memref<1x4x1xf32, #tpu.memory_space<vmem>>, vector<1x4x1xf32>,
    } else {
    }
    return
  }
  func.func @transform_0(%arg0: i32, %arg1: i32) -> (i32, i32, i32) {
    %c0_i32 = arith.constant 0 : i32
    %c0_i32_0 = arith.constant 0 : i32
    return %arg0, %c0_i32, %arg1 : i32, i32, i32
  }
  func.func @transform_1(%arg0: i32, %arg1: i32) -> (i32, i32, i32) {
    %c0_i32 = arith.constant 0 : i32
    %c0_i32_0 = arith.constant 0 : i32
    return %arg0, %c0_i32, %arg1 : i32, i32, i32
  }
  func.func @transform_2(%arg0: i32, %arg1: i32) -> (i32, i32, i32) {
    %c0_i32 = arith.constant 0 : i32
    %c0_i32_0 = arith.constant 0 : i32
    %c0_i32_1 = arith.constant 0 : i32
    return %arg0, %c0_i32, %c0_i32_0 : i32, i32, i32
  }
  func.func @transform_3(%arg0: i32, %arg1: i32) -> (i32, i32, i32) {
    %c0_i32 = arith.constant 0 : i32
    %c0_i32_0 = arith.constant 0 : i32
    %c0_i32_1 = arith.constant 0 : i32
    return %arg0, %c0_i32, %c0_i32_0 : i32, i32, i32
  }
}

</mosaic_0001>

<bundles_post_ra>
// kernel: tpu_custom_call.1
= control target key start
LH: loop header
LB: loop body
LE: loop exit
PB: predicated region body
PF: predicated region fallthrough
CT: control target
= control target key end

     0   :  { %9 = vsyncpa [#allocation3], 0  ;;  %s822_s0 = inlined_call_operand.hbm [shape: f32[2,4,256], index: 0, kind: input, shape index: {}]   ;;  %s823_s1 = inlined_call_operand.hbm [shape: f32[2,4,256], index: 1, kind: input, shape index: {}]   ;;  %s824_s2 = inlined_call_operand.vmem [shape: f32[2,4,1], index: 2, kind: output, shape index: {0}]   ;;  %s825_s3 = inlined_call_operand.vmem [shape: f32[2,4,1], index: 3, kind: output, shape index: {1}]  }
   0x1   :  { %11 = vsyncpa [#allocation3 + $0x1], 0 }
   0x2   :  { %12 = vsyncpa [#allocation5], 0 }
   0x3   :  { %14 = vsyncpa [#allocation5 + $0x1], 0  ;;  %s647_s12 = smov 0   ;;  %s649_s13 = smov 0  }
   0x4   :  { %s651_s14 = smov 0   ;;  %s653_s15 = smov 0  }
   0x5   :  { %s655_s16 = smov 0   ;;  %s657_s17 = smov 0  }
   0x6 LB: > { %s428_s18 = sadd.s32 4294967295, %s623_s17   ;;  %s32_s19 = sadd.s32 1, %s619_s16  ;;  %s623_s17 = sphi %s657_s17, %s20_s17   ;;  %s619_s16 = sphi %s655_s16, %s839_s16   ;;  %s615_s15 = sphi %s653_s15, %s838_s15   ;;  %s611_s14 = sphi %s651_s14, %s837_s14   ;;  %s607_s13 = sphi %s649_s13, %s836_s13   ;;  %s603_s12 = sphi %s647_s12, %s835_s12  }
   0x7   : > { %p34_p0 = scmp.ge.s32.totalorder %s32_s19, 2  ;;  %s41_s20 = sadd.s32 1, %s611_s14 }
   0x8   : > { %p48_p1 = scmp.ne.s32.totalorder %s611_s14, %s607_s13  ;;  %p49_p2 = scmp.eq.s32.totalorder %s623_s17, 0 }
   0x9   : > { %s841_s19 = smov (%p34_p0, %s32_s19), 0  ;;  %p54_p4 = scmp.ne.s32.totalorder %s607_s13, %s603_s12 }
   0xa   : > { %p683_p3 = por %p49_p2, %p48_p1  ;;  %s36_s22 = ssub.s32 %s619_s16, %s841_s19 }
   0xb   : > { %p55_p5 = scmp.eq.s32.totalorder %s428_s18, 0  ;;  %p39_p6 = scmp.eq.s32.totalorder %s36_s22, 0 }
   0xc   : > { %p458_p8 = scmp.lt.s32.totalorder %s623_s17, 2  ;;  %s699_s25 = sand.u32 1, %s611_s14  }
   0xd   : > { %p690_p7 = por %p55_p5, %p54_p4  ;;  %s445_s26 = sshll.u32 %s619_s16, 7 }
   0xe   : > { %s696_s24 = scalar_select %p39_p6, %s611_s14, %s41_s20  }
   0xf   : > { %s828_s23 = scalar_select %p690_p7, 1, 0 }
  0x10   : > { %s432_s27 = sshll.u32 %s699_s25, 3  ;;  %s708_s30 = scalar_lea.hbm %s822_s0, %s445_s26 }
  0x11   : > { %s162_s4 = scalar_lea.vmem [#allocation2], %s432_s27  ;;  %p714_p9 = pnand %p458_p8, %p683_p3 }
  0x12   : > { %s172_s5 = sshll.u32 %s162_s4, 4  ;;  %s159_s7 = scalar_lea.sflag [#allocation3], %s699_s25  ;;  %s718_s5 = int_to_ptr.vmem [resolvable:$true] %s172_s5 }
  0x13   : > { %s509_s8 = scalar_lea.hbm %s708_s30, 128  ;;  %p511_p13 = pneg %p714_p9 }
  0x14   : > { %p510_p12 = scmp.ne.s32.totalorder %s708_s30, %s509_s8  ;;  %s514_s11 = scalar_lea.hbm %s822_s0, 256 }
  0x15   : > { %p515_p2 = scmp.lt.u32.totalorder %s708_s30, %s822_s0  ;;  %p516_p3 = scmp.lt.u32.totalorder %s514_s11, %s509_s8 }
  0x16   : > { %p512_p0 = pnand %p511_p13, %p510_p12  ;;  %p518_p5 = scmp.lt.u32.totalorder %s509_s8, %s708_s30 }
  0x17   : > { %p517_p4 = por %p516_p3, %p515_p2 }
  0x18   : > { %p513_p1 = pneg %p512_p0 }
  0x19   : > { %p519_p6 = por %p518_p5, %p517_p4 }
  0x1b   : > { %p520_p8 = pnand %p519_p6, %p513_p1 }
  0x1d   : > { %523 = shalt.err (!%p520_p8)
}
  0x1e   : > { %s524_s20 = scalar_lea.vmem %s718_s5, 128  ;;  %s625_s21 = smov [#allocation2]  }
  0x1f   : > { %p525_p12 = scmp.ne.s32.totalorder %s718_s5, %s524_s20  ;;  %s529_s22 = sshll.u32 %s625_s21, 4  ;;  %s530_s22 = int_to_ptr.vmem [resolvable:$false] %s529_s22 }
  0x20   : > { %s531_s28 = scalar_lea.vmem %s530_s22, 256  ;;  %p532_p11 = scmp.lt.s32.totalorder %s718_s5, %s530_s22 }
  0x21   : > { %p527_p0 = pnand %p525_p12, %p511_p13  ;;  %p533_p2 = scmp.lt.s32.totalorder %s531_s28, %s524_s20 }
  0x23   : > { %p528_p10 = pneg %p527_p0  ;;  %p534_p3 = por %p533_p2, %p532_p11 }
  0x25   : > { %p535_p4 = pnand %p534_p3, %p528_p10 }
  0x27   : > { %538 = shalt.err (!%p535_p4)
}
  0x28   : > { %454 = dma.hbm_to_vmem [thread:$0]  (!%p714_p9), %s708_s30, 128, %s718_s5, %s159_s7  }
  0x29   : > { %p830_p1 = scmp.lt.s32.totalorder %s623_s17, 3  ;;  %p831_p5 = scmp.ge.s32.totalorder %s623_s17, 1 }
  0x2a   : > { %s761_s9 = scalar_lea.hbm %s823_s1, %s445_s26  ;;  %s183_s10 = scalar_lea.vmem [#allocation4], %s432_s27 }
  0x2b   : > { %p752_p6 = pnand %p831_p5, %p830_p1  ;;  %s193_s11 = sshll.u32 %s183_s10, 4  ;;  %s194_s11 = int_to_ptr.vmem [resolvable:$true] %s193_s11 }
  0x2c   : > { %s180_s30 = scalar_lea.sflag [#allocation5], %s699_s25  ;;  %s539_s5 = scalar_lea.hbm %s761_s9, 128 }
  0x2d   : > { %s832_s29 = scalar_select %p752_p6, 1, 0 }
  0x2e   : > { %p540_p10 = scmp.ne.s32.totalorder %s761_s9, %s539_s5  ;;  %s544_s26 = scalar_lea.hbm %s823_s1, 256 }
  0x2f   : > { %p545_p12 = scmp.lt.u32.totalorder %s761_s9, %s823_s1  ;;  %p546_p0 = scmp.lt.u32.totalorder %s544_s26, %s539_s5 }
  0x30   : > { %p542_p11 = pnand %p540_p10, %p511_p13  ;;  %p548_p3 = scmp.lt.u32.totalorder %s539_s5, %s761_s9 }
  0x31   : > { %p547_p2 = por %p546_p0, %p545_p12 }
  0x32   : > { %p543_p8 = pneg %p542_p11 }
  0x33   : > { %p549_p4 = por %p548_p3, %p547_p2 }
  0x35   : > { %p550_p1 = pnand %p549_p4, %p543_p8 }
  0x37   : > { %553 = shalt.err (!%p550_p1)
}
  0x38   : > { %s554_s25 = scalar_lea.vmem %s194_s11, 128  ;;  %s626_s27 = smov [#allocation4]  }
  0x39   : > { %p555_p5 = scmp.ne.s32.totalorder %s194_s11, %s554_s25  ;;  %s559_s21 = sshll.u32 %s626_s27, 4  ;;  %s560_s21 = int_to_ptr.vmem [resolvable:$false] %s559_s21 }
  0x3a   : > { %s561_s22 = scalar_lea.vmem %s560_s21, 256  ;;  %p562_p7 = scmp.lt.s32.totalorder %s194_s11, %s560_s21 }
  0x3b   : > { %p557_p10 = pnand %p555_p5, %p511_p13  ;;  %p563_p6 = scmp.lt.s32.totalorder %s561_s22, %s554_s25 }
  0x3d   : > { %p558_p11 = pneg %p557_p10  ;;  %p564_p0 = por %p563_p6, %p562_p7 }
  0x3f   : > { %p565_p12 = pnand %p564_p0, %p558_p11 }
  0x41   : > { %568 = shalt.err (!%p565_p12)
}
  0x42   : > { %457 = dma.hbm_to_vmem [thread:$0]  (!%p714_p9), %s761_s9, 128, %s194_s11, %s180_s30  }
  0x43   : > { %p833_p8 = scmp.ne.s32.totalorder %s832_s29, 0 }
  0x44   : > { %s204_s28 = sand.u32 (!%p833_p8), 1, %s607_s13   ;;  %p834_p13 = scmp.ne.s32.totalorder (!%p833_p8), %s828_s23, 0 }
  0x45   : > { %202 = sbr.rel (%p833_p8) target bundleno = 232 (0xe8), region = 28  ;;  %s439_s4 = sshll.u32 (!%p833_p8), %s204_s28, 3 }
  0x46   : > { %s205_s8 = scalar_lea.sflag (!%p833_p8), [#allocation3], %s204_s28  ;;  %s208_s10 = scalar_lea.vmem (!%p833_p8), [#allocation2], %s439_s4 }
  0x4c   : > { %594 = dma.done.wait (%p834_p13), %s205_s8, 128  }
  0x4d   : > { %596 = vsyncadd (%p834_p13), %s205_s8, 4294967168  ;;  %s214_s5 = scalar_lea.sflag [#allocation5], %s204_s28  ;;  %s217_s7 = scalar_lea.vmem [#allocation4], %s439_s4 }
  0x4e   : > { %598 = dma.done.wait (%p834_p13), %s214_s5, 128  }
  0x4f   : > { %600 = vsyncadd (%p834_p13), %s214_s5, 4294967168  ;;  %vm262_vm0 = vcmask 1043456   ;;  %v258_v0 = vld [vmem:[%s208_s10] sm:$0xff]  ;;  %v268_v1 = vld [vmem:[%s217_s7] sm:$0xff]  ;;  %p250_p7 = scmp.lt.s32.totalorder %s615_s15, 1  ;;  %vm281_vm1 = vcmask 3072  }
  0x50   : > { %v260_v2 = vcombine.high %v258_v0, %v258_v0  ;;  %v263_v3 = vsel %vm262_vm0, %v258_v0, -inf  ;;  %v270_v4 = vcombine.high %v268_v1, %v268_v1  ;;  %v272_v6 = vsel %vm262_vm0, %v268_v1, -inf }
  0x51   : > { %s843_s15 = smov (!%p250_p7, %s615_s15), 1 }
  0x52   : > { %v264_v5 = vsel %vm262_vm0, %v260_v2, -inf  ;;  %v273_v7 = vsel %vm262_vm0, %v270_v4, -inf  ;;  %s441_s6 = sshll.u32 %s843_s15, 2 }
  0x53   : > { %v265_v8 = vmax.f32 %v263_v3, %v264_v5  ;;  %v274_v9 = vmax.f32 %v272_v6, %v273_v7  ;;  %s253_s9 = scalar_lea.vmem %s824_s2, %s441_s6  ;;  %s257_s12 = scalar_lea.vmem %s825_s3, %s441_s6 }
  0x55   : > { %266 = vmax.xlane.f32.xlu0 %v265_v8 }
  0x59   : > { %275 = vmax.xlane.f32.xlu0 %v274_v9 }
  0xe2   : > { %v267_v10 = vpop.xlane.xlu0 %266 }
  0xe3   : > { %282 = vst.msk [vmem:[%s253_s9] sm:$0xf] %vm281_vm1, %v267_v10 }
  0xe6   : > { %v276_v11 = vpop.xlane.xlu0 %275 }
  0xe7   : > { %283 = vst.msk [vmem:[%s257_s12] sm:$0xf] %vm281_vm1, %v276_v11 }
  0xe8 PF: > { %s20_s17 = sadd.s32 1, %s623_s17   ;;  %s835_s12 = smov %s607_s13 }
  0xe9   : > { %p17_p9 = scmp.ge.s32.totalorder %s20_s17, 4   ;;  %s836_s13 = smov %s611_s14 }
  0xea   : > { %s837_s14 = smov %s696_s24  ;;  %s838_s15 = smov %s619_s16 }
  0xeb   : > { %s839_s16 = smov %s841_s19  ;;  %19 = sbr.rel (!%p17_p9) target bundleno = 6 (0x6), region = 101 }
  0xf2   :  { %328 = vsyncpa [#allocation3], 1 }
  0xf3   :  { %330 = vsyncpa [#allocation3 + $0x1], 1 }
  0xf4   :  { %331 = vsyncpa [#allocation5], 1 }
  0xf5   :  { %333 = vsyncpa [#allocation5 + $0x1], 1 }

</bundles_post_ra>
